<compile_context>
chip_gen: v7x
topology: tpu7x:2x2x1
jax: 0.10.0
libtpu: 0.0.40
codegen_flags: <defaults>
</compile_context>

<pallas_src>
import functools

import jax
import jax.numpy as jnp
from jax.experimental import pallas as pl
from jax.experimental.pallas import tpu as pltpu


def _round_up(a: int, m: int) -> int:
    return ((a + m - 1) // m) * m


def gcn_kernel(ahat_ref, x_ref, w_ref, b_ref, o_ref, acc_ref):
    """One (row_block i, k_block k) grid step.

    acc_ref accumulates agg = Ahat @ x for the current row block across k;
    on the last k block we apply the linear layer + bias + ReLU and store.
    """
    k = pl.program_id(1)

    @pl.when(k == 0)
    def _():
        acc_ref[...] = jnp.zeros_like(acc_ref)

    # agg partial:  [tm, tk] @ [tk, in_p]  -> [tm, in_p]   (MXU)
    acc_ref[...] += jnp.dot(
        ahat_ref[...], x_ref[...], preferred_element_type=jnp.float32
    )

    @pl.when(k == pl.num_programs(1) - 1)
    def _():
        # linear + bias + ReLU:  [tm, in_p] @ [in_p, out_p] -> [tm, out_p]
        out = (
            jnp.dot(acc_ref[...], w_ref[...], preferred_element_type=jnp.float32)
            + b_ref[...]
        )
        o_ref[...] = jnp.maximum(out, 0.0)


@functools.partial(jax.jit, static_argnames=("num_nodes", "blk"))
def gcn_layer(x, w, b, edge_index, *, num_nodes: int, blk: int = 128):
    """x: [N, in_dim], w: [in_dim, out_dim] (pre-transposed nn.Linear weight),
    b: [out_dim], edge_index: [2, E] int32 (row=source, col=target)."""
    N = num_nodes
    in_dim = x.shape[1]
    out_dim = w.shape[1]

    # ---- plain-XLA glue: build dense normalized adjacency Ahat -------------
    row, col = edge_index[0], edge_index[1]
    deg = jnp.zeros((N,), jnp.float32).at[col].add(1.0)
    dinv = jnp.where(deg > 0, deg ** -0.5, 0.0)          # inf -> 0
    edge_w = dinv[row] * dinv[col]
    ahat = jnp.zeros((N, N), jnp.float32).at[col, row].add(edge_w)

    # ---- pad to TPU-friendly shapes (lane-dense features, tileable N) ------
    Np = _round_up(max(N, blk), blk)
    in_p = _round_up(max(in_dim, 128), 128)
    out_p = _round_up(max(out_dim, 128), 128)

    ahat_p = jnp.pad(ahat, ((0, Np - N), (0, Np - N)))
    x_p = jnp.pad(x, ((0, Np - N), (0, in_p - in_dim)))
    w_p = jnp.pad(w, ((0, in_p - in_dim), (0, out_p - out_dim)))
    b_p = jnp.pad(b.reshape(1, out_dim), ((0, 0), (0, out_p - out_dim)))

    grid = (Np // blk, Np // blk)  # (row blocks, reduction blocks) — reduction innermost

    cost = pl.CostEstimate(
        flops=2 * Np * Np * in_p + 2 * Np * in_p * out_p,
        transcendentals=0,
        bytes_accessed=4 * (Np * Np + Np * in_p + in_p * out_p + Np * out_p),
    )

    out_p_arr = pl.pallas_call(
        gcn_kernel,
        out_shape=jax.ShapeDtypeStruct((Np, out_p), jnp.float32),
        grid_spec=pltpu.PrefetchScalarGridSpec(
            num_scalar_prefetch=0,
            grid=grid,
            in_specs=[
                pl.BlockSpec((blk, blk), lambda i, k: (i, k)),     # Ahat tile
                pl.BlockSpec((blk, in_p), lambda i, k: (k, 0)),    # x k-block
                pl.BlockSpec((in_p, out_p), lambda i, k: (0, 0)),  # W (resident)
                pl.BlockSpec((1, out_p), lambda i, k: (0, 0)),     # bias
            ],
            out_specs=pl.BlockSpec((blk, out_p), lambda i, k: (i, 0)),
            scratch_shapes=[pltpu.VMEM((blk, in_p), jnp.float32)],
        ),
        compiler_params=pltpu.CompilerParams(
            dimension_semantics=("parallel", "arbitrary"),
            vmem_limit_bytes=64 * 1024 * 1024,
        ),
        cost_estimate=cost,
    )(ahat_p, x_p, w_p, b_p)

    return out_p_arr[:N, :out_dim]


def reference(x, w, b, edge_index, num_nodes):
    """Pure-JAX replica of the PyTorch GCNLayer.forward."""
    N = num_nodes
    row, col = edge_index[0], edge_index[1]
    deg = jnp.zeros((N,), jnp.float32).at[col].add(1.0)
    dinv = deg ** -0.5
    dinv = jnp.where(jnp.isinf(dinv), 0.0, dinv)
    norm = dinv[row] * dinv[col]
    agg = jnp.zeros((N, x.shape[1]), jnp.float32).at[col].add(norm[:, None] * x[row])
    out = agg @ w + b
    return jnp.maximum(out, 0.0)


if __name__ == "__main__":
    N, in_dim, out_dim = 16, 12, 32

    key = jax.random.PRNGKey(0)
    k_x, k_w, k_b = jax.random.split(key, 3)

    x = jax.random.normal(k_x, (N, in_dim), dtype=jnp.float32)
    # nn.Linear(in_dim, out_dim).weight has shape [out_dim, in_dim];
    # store transposed for agg @ W. Bias has shape [out_dim].
    w = jax.random.normal(k_w, (in_dim, out_dim), dtype=jnp.float32) * 0.1
    b = jax.random.normal(k_b, (out_dim,), dtype=jnp.float32) * 0.1

    # Deterministic edge_index: self-loops + ring (i -> i+1) + skip (i -> i+2)
    nodes = jnp.arange(N, dtype=jnp.int32)
    row = jnp.concatenate([nodes, nodes, nodes])
    col = jnp.concatenate([nodes, (nodes + 1) % N, (nodes + 2) % N])
    edge_index = jnp.stack([row, col])  # [2, E]

    out = gcn_layer(x, w, b, edge_index, num_nodes=N)
    out = jax.block_until_ready(out)

    ref = reference(x, w, b, edge_index, N)
    assert out.shape == (N, out_dim)
    assert jnp.allclose(out, ref, atol=1e-4, rtol=1e-4), float(
        jnp.max(jnp.abs(out - ref))
    )

    print("KERNEL_OK")
</pallas_src>

<mosaic_0001>
module attributes {stable_mosaic.version = 11 : i64} {
  func.func private @main(%arg0: i32) attributes {dimension_semantics = [#tpu.dimension_semantics<core_parallel>], iteration_bounds = array<i64: 2>, tpu.core_type = #tpu.core_type<sc_scalar_subcore>, window_params = []} {
    return
  }
}

module attributes {stable_mosaic.version = 11 : i64} {
  func.func private @main(%arg0: i32) attributes {dimension_semantics = [#tpu.dimension_semantics<core_parallel>], iteration_bounds = array<i64: 2>, tpu.core_type = #tpu.core_type<sc_scalar_subcore>, window_params = []} {
    return
  }
}

module attributes {stable_mosaic.version = 11 : i64} {
  func.func @gcn_kernel(%arg0: i32, %arg1: i32, %arg2: memref<128x128xf32, #tpu.memory_space<vmem>>, %arg3: memref<128x128xf32, #tpu.memory_space<vmem>>, %arg4: memref<128x128xf32, #tpu.memory_space<vmem>>, %arg5: memref<1x128xf32, #tpu.memory_space<vmem>>, %arg6: memref<128x128xf32, #tpu.memory_space<vmem>>, %arg7: memref<128x128xf32, #tpu.memory_space<vmem>>) attributes {dimension_semantics = [#tpu.dimension_semantics<parallel>, #tpu.dimension_semantics<arbitrary>], iteration_bounds = array<i64: 1, 1>, scalar_prefetch = 0 : i64, scratch_operands = 1 : i64, tpu.core_type = #tpu.core_type<tc>, window_params = [{transform_indices = @transform_0, window_bounds = array<i64: 128, 128>}, {transform_indices = @transform_1, window_bounds = array<i64: 128, 128>}, {pipeline_mode = #tpu.pipeline_mode<synchronous>, transform_indices = @transform_2, window_bounds = array<i64: 128, 128>}, {pipeline_mode = #tpu.pipeline_mode<synchronous>, transform_indices = @transform_3, window_bounds = array<i64: 1, 128>}, {transform_indices = @transform_4, window_bounds = array<i64: 128, 128>}]} {
    %c0_i32 = arith.constant 0 : i32
    %0 = arith.cmpi eq, %arg1, %c0_i32 : i32
    %1 = arith.extui %0 : i1 to i32
    %c0_i32_0 = arith.constant 0 : i32
    %2 = arith.cmpi ne, %1, %c0_i32_0 : i32
    scf.if %2 {
      %cst_10 = arith.constant 0.000000e+00 : f32
      %12 = vector.broadcast %cst_10 : f32 to vector<128x128xf32>
      %c0_11 = arith.constant 0 : index
      %c0_12 = arith.constant 0 : index
      %13 = vector.load %arg7[%c0_11, %c0_12] : memref<128x128xf32, #tpu.memory_space<vmem>>, vector<128x128xf32>
      tpu.vector_store %arg7[%c0_11, %c0_12], %12 {strides = array<i32>} : memref<128x128xf32, #tpu.memory_space<vmem>>, vector<128x128xf32>,
    } else {
    }
    %c0 = arith.constant 0 : index
    %c0_1 = arith.constant 0 : index
    %3 = vector.load %arg7[%c0, %c0_1] : memref<128x128xf32, #tpu.memory_space<vmem>>, vector<128x128xf32>
    %c0_2 = arith.constant 0 : index
    %c0_3 = arith.constant 0 : index
    %4 = vector.load %arg2[%c0_2, %c0_3] : memref<128x128xf32, #tpu.memory_space<vmem>>, vector<128x128xf32>
    %c0_4 = arith.constant 0 : index
    %c0_5 = arith.constant 0 : index
    %5 = vector.load %arg3[%c0_4, %c0_5] : memref<128x128xf32, #tpu.memory_space<vmem>>, vector<128x128xf32>
    %cst = arith.constant dense<0.000000e+00> : vector<128x128xf32>
    %6 = tpu.matmul %4, %5, %cst {dimension_numbers = #tpu.dot_dimension_numbers<[1], [0], [0], [1], [0, 0, 1, 1], [], []>} : vector<128x128xf32>, vector<128x128xf32>, vector<128x128xf32> -> vector<128x128xf32>
    %7 = arith.addf %3, %6 : vector<128x128xf32>
    %c0_6 = arith.constant 0 : index
    %c0_7 = arith.constant 0 : index
    %8 = vector.load %arg7[%c0_6, %c0_7] : memref<128x128xf32, #tpu.memory_space<vmem>>, vector<128x128xf32>
    tpu.vector_store %arg7[%c0_6, %c0_7], %7 {strides = array<i32>} : memref<128x128xf32, #tpu.memory_space<vmem>>, vector<128x128xf32>,
    %c0_i32_8 = arith.constant 0 : i32
    %9 = arith.cmpi eq, %arg1, %c0_i32_8 : i32
    %10 = arith.extui %9 : i1 to i32
    %c0_i32_9 = arith.constant 0 : i32
    %11 = arith.cmpi ne, %10, %c0_i32_9 : i32
    scf.if %11 {
      %c0_10 = arith.constant 0 : index
      %c0_11 = arith.constant 0 : index
      %12 = vector.load %arg7[%c0_10, %c0_11] : memref<128x128xf32, #tpu.memory_space<vmem>>, vector<128x128xf32>
      %c0_12 = arith.constant 0 : index
      %c0_13 = arith.constant 0 : index
      %13 = vector.load %arg4[%c0_12, %c0_13] : memref<128x128xf32, #tpu.memory_space<vmem>>, vector<128x128xf32>
      %cst_14 = arith.constant dense<0.000000e+00> : vector<128x128xf32>
      %14 = tpu.matmul %12, %13, %cst_14 {dimension_numbers = #tpu.dot_dimension_numbers<[1], [0], [0], [1], [0, 0, 1, 1], [], []>} : vector<128x128xf32>, vector<128x128xf32>, vector<128x128xf32> -> vector<128x128xf32>
      %c0_15 = arith.constant 0 : index
      %c0_16 = arith.constant 0 : index
      %15 = vector.load %arg5[%c0_15, %c0_16] : memref<1x128xf32, #tpu.memory_space<vmem>>, vector<1x128xf32>
      %16 = vector.broadcast %15 : vector<1x128xf32> to vector<128x128xf32>
      %17 = arith.addf %14, %16 : vector<128x128xf32>
      %cst_17 = arith.constant 0.000000e+00 : f32
      %18 = vector.broadcast %cst_17 : f32 to vector<128x128xf32>
      %19 = arith.maximumf %17, %18 : vector<128x128xf32>
      %c0_18 = arith.constant 0 : index
      %c0_19 = arith.constant 0 : index
      %20 = vector.load %arg6[%c0_18, %c0_19] : memref<128x128xf32, #tpu.memory_space<vmem>>, vector<128x128xf32>
      tpu.vector_store %arg6[%c0_18, %c0_19], %19 {strides = array<i32>} : memref<128x128xf32, #tpu.memory_space<vmem>>, vector<128x128xf32>,
    } else {
    }
    return
  }
  func.func @transform_0(%arg0: i32, %arg1: i32) -> (i32, i32) {
    %c0_i32 = arith.constant 0 : i32
    return %arg0, %arg1 : i32, i32
  }
  func.func @transform_1(%arg0: i32, %arg1: i32) -> (i32, i32) {
    %c0_i32 = arith.constant 0 : i32
    %c0_i32_0 = arith.constant 0 : i32
    return %arg1, %c0_i32 : i32, i32
  }
  func.func @transform_2(%arg0: i32, %arg1: i32) -> (i32, i32) {
    %c0_i32 = arith.constant 0 : i32
    %c0_i32_0 = arith.constant 0 : i32
    %c0_i32_1 = arith.constant 0 : i32
    return %c0_i32, %c0_i32_0 : i32, i32
  }
  func.func @transform_3(%arg0: i32, %arg1: i32) -> (i32, i32) {
    %c0_i32 = arith.constant 0 : i32
    %c0_i32_0 = arith.constant 0 : i32
    %c0_i32_1 = arith.constant 0 : i32
    return %c0_i32, %c0_i32_0 : i32, i32
  }
  func.func @transform_4(%arg0: i32, %arg1: i32) -> (i32, i32) {
    %c0_i32 = arith.constant 0 : i32
    %c0_i32_0 = arith.constant 0 : i32
    return %arg0, %c0_i32 : i32, i32
  }
}

</mosaic_0001>

<bundles_post_ra>
// kernel: mul.1
= control target key start
LH: loop header
LB: loop body
LE: loop exit
PB: predicated region body
PF: predicated region fallthrough
CT: control target
= control target key end

     0   :  { %s34_s0 = inlined_call_operand.vmem [shape: f32[48], index: 0, kind: input, shape index: {}]   ;;  %s35_s1 = inlined_call_operand.vmem [shape: f32[48], index: 1, kind: input, shape index: {}]   ;;  %s36_s2 = inlined_call_operand.vmem [shape: f32[48], index: 2, kind: output, shape index: {}]  }
   0x1   :  { %v3_v0 = vld [vmem:[%s34_s0] sm:$0x1] }
   0x2   :  { %v4_v1 = vld [vmem:[%s35_s1] sm:$0x1] }
   0x3   :  { %v7_v2 = vmul.f32 %v4_v1, %v3_v0 }
   0x5   :  { %9 = vst [vmem:[%s36_s2] sm:$0x1] %v7_v2 }

// kernel: gcn_layer.1
= control target key start
LH: loop header
LB: loop body
LE: loop exit
PB: predicated region body
PF: predicated region fallthrough
CT: control target
= control target key end

     0   :  { %9 = vsyncpa [#allocation4], 0  ;;  %s1031_s0 = inlined_call_operand.hbm [shape: f32[128,128], index: 0, kind: input, shape index: {}]   ;;  %s1032_s1 = inlined_call_operand.hbm [shape: f32[128,128], index: 1, kind: input, shape index: {}]   ;;  %s1033_s2 = inlined_call_operand.hbm [shape: f32[128,128], index: 2, kind: input, shape index: {}]   ;;  %s1034_s3 = inlined_call_operand.hbm [shape: f32[1,128], index: 3, kind: input, shape index: {}]   ;;  %s1035_s4 = inlined_call_operand.hbm [shape: f32[128,128], index: 4, kind: output, shape index: {}]  }
   0x1   :  { %10 = vsyncpa [#allocation7], 0 }
   0x2   :  { %11 = vsyncpa [#allocation10], 0 }
   0x3   :  { %12 = vsyncpa [#allocation5], 0  ;;  %s920_s15 = smov [#allocation6]   ;;  %s921_s17 = smov [#allocation3]  }
   0x4   :  { %s30_s16 = sshll.u32 %s920_s15, 4  ;;  %s18_s18 = sshll.u32 %s921_s17, 4  ;;  %s31_s16 = int_to_ptr.vmem [resolvable:$true] %s30_s16  ;;  %s952_s18 = int_to_ptr.vmem [resolvable:$true] %s18_s18 }
   0x5   :  { %s802_s21 = scalar_lea.hbm %s1032_s1, 2048 }
   0x6   :  { %p803_p0 = scmp.ne.s32.totalorder %s1032_s1, %s802_s21  ;;  %p806_p1 = scmp.lt.u32.totalorder %s802_s21, %s1032_s1 }
   0x8   :  { %p808_p2 = pnand %p806_p1, %p803_p0 }
   0xa   :  { %811 = shalt.err (!%p808_p2)
}
   0xb   :  { %s812_s26 = scalar_lea.vmem %s31_s16, 2048  ;;  %p817_p4 = scmp.lt.s32.totalorder %s31_s16, %s31_s16 }
   0xc   :  { %p813_p3 = scmp.ne.s32.totalorder %s31_s16, %s812_s26  ;;  %p818_p5 = scmp.lt.s32.totalorder %s812_s26, %s812_s26 }
   0xe   :  { %p819_p6 = por %p818_p5, %p817_p4 }
  0x10   :  { %p820_p7 = pnand %p819_p6, %p813_p3 }
  0x12   :  { %823 = shalt.err (!%p820_p7)
}
  0x13   :  { %s922_s27 = smov 128   ;;  %s923_s28 = smov 8  }
  0x14   :  { %36 = dma.hbm_to_vmem [thread:$0]  %s1032_s1, 2048, %s31_s16, [#allocation7], %s922_s27, %s922_s27, %s923_s28  }
  0x15   :  { %s824_s7 = scalar_lea.hbm %s1031_s0, 2048 }
  0x16   :  { %p825_p8 = scmp.ne.s32.totalorder %s1031_s0, %s824_s7  ;;  %p828_p9 = scmp.lt.u32.totalorder %s824_s7, %s1031_s0 }
  0x18   :  { %p830_p10 = pnand %p828_p9, %p825_p8 }
  0x1a   :  { %833 = shalt.err (!%p830_p10)
}
  0x1b   :  { %s834_s12 = scalar_lea.vmem %s952_s18, 2048  ;;  %p839_p12 = scmp.lt.s32.totalorder %s952_s18, %s952_s18 }
  0x1c   :  { %p835_p11 = scmp.ne.s32.totalorder %s952_s18, %s834_s12  ;;  %p840_p13 = scmp.lt.s32.totalorder %s834_s12, %s834_s12 }
  0x1e   :  { %p841_p0 = por %p840_p13, %p839_p12 }
  0x20   :  { %p842_p1 = pnand %p841_p0, %p835_p11 }
  0x22   :  { %845 = shalt.err (!%p842_p1)
}
  0x23   :  { %24 = dma.hbm_to_vmem [thread:$0]  %s1031_s0, 2048, %s952_s18, [#allocation4], %s922_s27, %s922_s27, %s923_s28  }
  0x24   :  { %s924_s14 = smov [#allocation8]   ;;  %s925_s16 = smov [#allocation9]  }
  0x25   :  { %s42_s15 = sshll.u32 %s924_s14, 4  ;;  %s55_s17 = sshll.u32 %s925_s16, 4  ;;  %s43_s15 = int_to_ptr.vmem [resolvable:$true] %s42_s15  ;;  %s56_s17 = int_to_ptr.vmem [resolvable:$true] %s55_s17 }
  0x26   :  { %s846_s21 = scalar_lea.hbm %s1033_s2, 2048 }
  0x27   :  { %p847_p2 = scmp.ne.s32.totalorder %s1033_s2, %s846_s21  ;;  %p850_p3 = scmp.lt.u32.totalorder %s846_s21, %s1033_s2 }
  0x29   :  { %p852_p4 = pnand %p850_p3, %p847_p2 }
  0x2b   :  { %855 = shalt.err (!%p852_p4)
}
  0x2c   :  { %s856_s0 = scalar_lea.vmem %s43_s15, 2048  ;;  %p861_p6 = scmp.lt.s32.totalorder %s43_s15, %s43_s15 }
  0x2d   :  { %p857_p5 = scmp.ne.s32.totalorder %s43_s15, %s856_s0  ;;  %p862_p7 = scmp.lt.s32.totalorder %s856_s0, %s856_s0 }
  0x2f   :  { %p863_p8 = por %p862_p7, %p861_p6 }
  0x31   :  { %p864_p9 = pnand %p863_p8, %p857_p5 }
  0x33   :  { %867 = shalt.err (!%p864_p9)
}
  0x34   :  { %48 = dma.hbm_to_vmem [thread:$0]  %s1033_s2, 2048, %s43_s15, [#allocation7], %s922_s27, %s922_s27, %s923_s28  }
  0x35   :  { %s868_s5 = scalar_lea.hbm %s1034_s3, 16 }
  0x36   :  { %p869_p10 = scmp.ne.s32.totalorder %s1034_s3, %s868_s5  ;;  %p872_p11 = scmp.lt.u32.totalorder %s868_s5, %s1034_s3 }
  0x38   :  { %p874_p12 = pnand %p872_p11, %p869_p10 }
  0x3a   :  { %877 = shalt.err (!%p874_p12)
}
  0x3b   :  { %s878_s10 = scalar_lea.vmem %s56_s17, 16  ;;  %s882_s11 = scalar_lea.vmem %s56_s17, 32 }
  0x3c   :  { %p879_p13 = scmp.ne.s32.totalorder %s56_s17, %s878_s10  ;;  %p883_p0 = scmp.lt.s32.totalorder %s56_s17, %s56_s17 }
  0x3d   :  { %p884_p1 = scmp.lt.s32.totalorder %s882_s11, %s878_s10 }
  0x3f   :  { %p885_p2 = por %p884_p1, %p883_p0 }
  0x41   :  { %p886_p3 = pnand %p885_p2, %p879_p13 }
  0x43   :  { %889 = shalt.err (!%p886_p3)
}
  0x44   :  { %58 = dma.hbm_to_vmem [thread:$0]  %s1034_s3, 16, %s56_s17, [#allocation10]  }
  0x45   :  { %912 = dma.done.wait [#allocation4], 2048  }
  0x46   :  { %913 = vsyncadd [#allocation4], 4294965248 }
  0x47   :  { %914 = dma.done.wait [#allocation7], 4096  }
  0x48   :  { %915 = vsyncadd [#allocation7], 4294963200 }
  0x49   :  { %916 = dma.done.wait [#allocation10], 16  }
  0x4a   :  { %917 = vsyncadd [#allocation10], 4294967280  ;;  %v123_v0 = vld [vmem:[#allocation6] sm:$0xff]  ;;  %v124_v1 = vld [vmem:[#allocation6 + $0x8] sm:$0xff]  ;;  %s926_s3 = smov [#allocation11]  }
  0x4b   :  { %v125_v2 = vld [vmem:[#allocation6 + $0x10] sm:$0xff]  ;;  %v731_v3 = vpack.c.bf16 %v124_v1, %v123_v0  ;;  %v126_v4 = vld [vmem:[#allocation6 + $0x18] sm:$0xff]  ;;  %v127_v6 = vld [vmem:[#allocation6 + $0x20] sm:$0xff]  ;;  %s540_s1 = sshll.u32 %s926_s3, 4  ;;  %s541_s1 = int_to_ptr.vmem [resolvable:$true] %s540_s1 }
  0x4c   :  { %v735_v5 = vpack.c.bf16 %v126_v4, %v125_v2  ;;  %v128_v7 = vld [vmem:[#allocation6 + $0x28] sm:$0xff]  ;;  %v107_v9 = vld [vmem:[#allocation3] sm:$0xff]  ;;  %v129_v10 = vld [vmem:[#allocation6 + $0x30] sm:$0xff]  ;;  %s890_s13 = scalar_lea.vmem %s541_s1, 2048  ;;  %p895_p5 = scmp.lt.s32.totalorder %s541_s1, %s541_s1 }
  0x4d   :  { %732 = vmatprep.subr.bf16.mxu0 %v731_v3  ;;  %v739_v8 = vpack.c.bf16 %v128_v7, %v127_v6  ;;  %v130_v11 = vld [vmem:[#allocation6 + $0x38] sm:$0xff]  ;;  %651 = vmatprep.mubr.f32.mxu0 %v107_v9  ;;  %v131_v13 = vld [vmem:[#allocation6 + $0x40] sm:$0xff]  ;;  %v132_v14 = vld [vmem:[#allocation6 + $0x48] sm:$0xff]  ;;  %p891_p4 = scmp.ne.s32.totalorder %s541_s1, %s890_s13  ;;  %p896_p6 = scmp.lt.s32.totalorder %s890_s13, %s890_s13 }
  0x4e   :  { %734 = vmatpush3.bf16.msra.mxu0 %v731_v3  ;;  %v743_v12 = vpack.c.bf16 %v130_v11, %v129_v10  ;;  %v335_v15 = vld [vmem:[#allocation8] sm:$0xff]  ;;  %v336_v16 = vld [vmem:[#allocation8 + $0x8] sm:$0xff]  ;;  %v337_v17 = vld [vmem:[#allocation8 + $0x10] sm:$0xff]  ;;  %v747_v21 = vpack.c.bf16 %v132_v14, %v131_v13 }
  0x4f   :  { %736 = vmatprep.subr.bf16.mxu0 %v735_v5  ;;  %v338_v18 = vld [vmem:[#allocation8 + $0x18] sm:$0xff]  ;;  %v763_v19 = vpack.c.bf16 %v336_v16, %v335_v15  ;;  %v339_v22 = vld [vmem:[#allocation8 + $0x20] sm:$0xff]  ;;  %v340_v23 = vld [vmem:[#allocation8 + $0x28] sm:$0xff]  ;;  %p897_p7 = por %p896_p6, %p895_p5 }
  0x50   :  { %v767_v20 = vpack.c.bf16 %v338_v18, %v337_v17  ;;  %v133_v24 = vld [vmem:[#allocation6 + $0x50] sm:$0xff]  ;;  %v134_v25 = vld [vmem:[#allocation6 + $0x58] sm:$0xff]  ;;  %v771_v26 = vpack.c.bf16 %v340_v23, %v339_v22  ;;  %v135_v30 = vld [vmem:[#allocation6 + $0x60] sm:$0xff] }
  0x51   :  { %764 = vmatprep.subr.bf16.mxu1 %v763_v19  ;;  %v751_v27 = vpack.c.bf16 %v134_v25, %v133_v24  ;;  %v341_v28 = vld [vmem:[#allocation8 + $0x30] sm:$0xff]  ;;  %v342_v29 = vld [vmem:[#allocation8 + $0x38] sm:$0xff]  ;;  %v136_v31 = vld [vmem:[#allocation6 + $0x68] sm:$0xff]  ;;  %p898_p8 = pnand %p897_p7, %p891_p4 }
  0x52   :  { %738 = vmatpush3.bf16.msra.mxu0 %v735_v5  ;;  %766 = vmatpush3.bf16.msra.mxu1 %v763_v19  ;;  %v775_v32 = vpack.c.bf16 %v342_v29, %v341_v28  ;;  %v755_v33 = vpack.c.bf16 %v136_v31, %v135_v30  ;;  %v343_v34 = vld [vmem:[#allocation8 + $0x40] sm:$0xff]  ;;  %v344_v35 = vld [vmem:[#allocation8 + $0x48] sm:$0xff]  ;;  %v137_v36 = vld [vmem:[#allocation6 + $0x70] sm:$0xff] }
  0x53   :  { %740 = vmatprep.subr.bf16.mxu0 %v739_v8  ;;  %768 = vmatprep.subr.bf16.mxu1 %v767_v20  ;;  %v138_v37 = vld [vmem:[#allocation6 + $0x78] sm:$0xff]  ;;  %v779_v38 = vpack.c.bf16 %v344_v35, %v343_v34  ;;  %v345_v40 = vld [vmem:[#allocation8 + $0x50] sm:$0xff]  ;;  %v347_v43 = vld [vmem:[#allocation8 + $0x60] sm:$0xff] }
  0x54   :  { %v759_v39 = vpack.c.bf16 %v138_v37, %v137_v36  ;;  %v346_v41 = vld [vmem:[#allocation8 + $0x58] sm:$0xff]  ;;  %v348_v44 = vld [vmem:[#allocation8 + $0x68] sm:$0xff]  ;;  %v109_v47 = vld [vmem:[#allocation3 + $0x10] sm:$0xff] }
  0x55   :  { %v783_v42 = vpack.c.bf16 %v346_v41, %v345_v40  ;;  %v108_v45 = vld [vmem:[#allocation3 + $0x8] sm:$0xff]  ;;  %v787_v46 = vpack.c.bf16 %v348_v44, %v347_v43  ;;  %v349_v48 = vld [vmem:[#allocation8 + $0x70] sm:$0xff]  ;;  %v350_v49 = vld [vmem:[#allocation8 + $0x78] sm:$0xff] }
  0x56   :  { %742 = vmatpush3.bf16.msra.mxu0 %v739_v8  ;;  %770 = vmatpush3.bf16.msra.mxu1 %v767_v20  ;;  %v110_v50 = vld [vmem:[#allocation3 + $0x18] sm:$0xff]  ;;  %v791_v51 = vpack.c.bf16 %v350_v49, %v349_v48  ;;  %v111_v52 = vld [vmem:[#allocation3 + $0x20] sm:$0xff]  ;;  %v112_v53 = vld [vmem:[#allocation3 + $0x28] sm:$0xff] }
  0x57   :  { %744 = vmatprep.subr.bf16.mxu0 %v743_v12  ;;  %772 = vmatprep.subr.bf16.mxu1 %v771_v26  ;;  %v113_v54 = vld [vmem:[#allocation3 + $0x30] sm:$0xff]  ;;  %v114_v55 = vld [vmem:[#allocation3 + $0x38] sm:$0xff]  ;;  %v115_v56 = vld [vmem:[#allocation3 + $0x40] sm:$0xff] }
  0x58   :  { %v116_v57 = vld [vmem:[#allocation3 + $0x48] sm:$0xff]  ;;  %v117_v58 = vld [vmem:[#allocation3 + $0x50] sm:$0xff]  ;;  %v118_v59 = vld [vmem:[#allocation3 + $0x58] sm:$0xff] }
  0x59   :  { %v119_v60 = vld [vmem:[#allocation3 + $0x60] sm:$0xff]  ;;  %v120_v61 = vld [vmem:[#allocation3 + $0x68] sm:$0xff]  ;;  %v121_v62 = vld [vmem:[#allocation3 + $0x70] sm:$0xff] }
  0x5a   :  { %746 = vmatpush3.bf16.msra.mxu0 %v743_v12  ;;  %774 = vmatpush3.bf16.msra.mxu1 %v771_v26  ;;  %v122_v63 = vld [vmem:[#allocation3 + $0x78] sm:$0xff]  ;;  %v554_v16 = vld [vmem:[#allocation9] ss:$0 sm:$0xff] }
  0x5b   :  { %748 = vmatprep.subr.bf16.mxu0 %v747_v21  ;;  %776 = vmatprep.subr.bf16.mxu1 %v775_v32 }
  0x5e   :  { %750 = vmatpush3.bf16.msra.mxu0 %v747_v21  ;;  %778 = vmatpush3.bf16.msra.mxu1 %v775_v32 }
  0x5f   :  { %752 = vmatprep.subr.bf16.mxu0 %v751_v27  ;;  %780 = vmatprep.subr.bf16.mxu1 %v779_v38 }
  0x62   :  { %754 = vmatpush3.bf16.msra.mxu0 %v751_v27  ;;  %782 = vmatpush3.bf16.msra.mxu1 %v779_v38 }
  0x63   :  { %756 = vmatprep.subr.bf16.mxu0 %v755_v33  ;;  %784 = vmatprep.subr.bf16.mxu1 %v783_v42 }
  0x66   :  { %758 = vmatpush3.bf16.msra.mxu0 %v755_v33  ;;  %786 = vmatpush3.bf16.msra.mxu1 %v783_v42 }
  0x67   :  { %760 = vmatprep.subr.bf16.mxu0 %v759_v39  ;;  %788 = vmatprep.subr.bf16.mxu1 %v787_v46 }
  0x6a   :  { %762 = vmatpush3.bf16.msra.mxu0 %v759_v39  ;;  %790 = vmatpush3.bf16.msra.mxu1 %v787_v46 }
  0x6b   :  { %792 = vmatprep.subr.bf16.mxu1 %v791_v51 }
  0x6d   :  { %652 = vmatmul.mubr.f32.vlgmr.msra.gmra.mrb[0].mxu0 %v108_v45 }
  0x6e   :  { %654 = vmatprep.mubr.f32.mxu0 %v109_v47  ;;  %794 = vmatpush3.bf16.msra.mxu1 %v791_v51 }
  0x71   :  { %655 = vmatmul.mubr.f32.gmra.mrb[2].mxu0 %v110_v50 }
  0x72   :  { %657 = vmatprep.mubr.f32.mxu0 %v111_v52 }
  0x75   :  { %658 = vmatmul.mubr.f32.gmra.mrb[4].mxu0 %v112_v53 }
  0x76   :  { %660 = vmatprep.mubr.f32.mxu0 %v113_v54 }
  0x79   :  { %661 = vmatmul.mubr.f32.gmra.mrb[6].mxu0 %v114_v55 }
  0x7a   :  { %663 = vmatprep.mubr.f32.mxu0 %v115_v56 }
  0x7d   :  { %664 = vmatmul.mubr.f32.gmra.mrb[8].mxu0 %v116_v57 }
  0x7e   :  { %666 = vmatprep.mubr.f32.mxu0 %v117_v58 }
  0x81   :  { %667 = vmatmul.mubr.f32.gmra.mrb[10].mxu0 %v118_v59 }
  0x82   :  { %669 = vmatprep.mubr.f32.mxu0 %v119_v60 }
  0x85   :  { %670 = vmatmul.mubr.f32.gmra.mrb[12].mxu0 %v120_v61 }
  0x86   :  { %672 = vmatprep.mubr.f32.mxu0 %v121_v62 }
  0x89   :  { %673 = vmatmul.mubr.f32.gmra.mrb[14].mxu0 %v122_v63 }
 0x140   :  { %v653_v0 = vpop.f32.mrb[0].mxu0 }
 0x141   :  { %v205_v1 = vpop.f32.mrb[1].mxu0 }
 0x142   :  { %707 = vmatprep.mubr.f32.mxu1 %v205_v1 }
 0x143   :  { %708 = vmatmul.mubr.f32.vlgmr.msra.gmra.mrb[0].mxu1 %v653_v0 }
 0x144   :  { %v656_v2 = vpop.f32.mrb[2].mxu0 }
 0x145   :  { %v215_v3 = vpop.f32.mrb[3].mxu0 }
 0x146   :  { %710 = vmatprep.mubr.f32.mxu1 %v215_v3 }
 0x147   :  { %711 = vmatmul.mubr.f32.gmra.mrb[2].mxu1 %v656_v2 }
 0x148   :  { %v659_v4 = vpop.f32.mrb[4].mxu0 }
 0x149   :  { %v225_v5 = vpop.f32.mrb[5].mxu0 }
 0x14a   :  { %713 = vmatprep.mubr.f32.mxu1 %v225_v5 }
 0x14b   :  { %714 = vmatmul.mubr.f32.gmra.mrb[4].mxu1 %v659_v4 }
 0x14c   :  { %v662_v6 = vpop.f32.mrb[6].mxu0 }
 0x14d   :  { %v235_v7 = vpop.f32.mrb[7].mxu0 }
 0x14e   :  { %716 = vmatprep.mubr.f32.mxu1 %v235_v7 }
 0x14f   :  { %717 = vmatmul.mubr.f32.gmra.mrb[6].mxu1 %v662_v6 }
 0x150   :  { %v665_v8 = vpop.f32.mrb[8].mxu0 }
 0x151   :  { %v245_v9 = vpop.f32.mrb[9].mxu0 }
 0x152   :  { %719 = vmatprep.mubr.f32.mxu1 %v245_v9 }
 0x153   :  { %720 = vmatmul.mubr.f32.gmra.mrb[8].mxu1 %v665_v8 }
 0x154   :  { %v668_v10 = vpop.f32.mrb[10].mxu0 }
 0x155   :  { %v255_v11 = vpop.f32.mrb[11].mxu0 }
 0x156   :  { %722 = vmatprep.mubr.f32.mxu1 %v255_v11 }
 0x157   :  { %723 = vmatmul.mubr.f32.gmra.mrb[10].mxu1 %v668_v10 }
 0x158   :  { %v671_v12 = vpop.f32.mrb[12].mxu0 }
 0x159   :  { %v265_v13 = vpop.f32.mrb[13].mxu0 }
 0x15a   :  { %725 = vmatprep.mubr.f32.mxu1 %v265_v13 }
 0x15b   :  { %726 = vmatmul.mubr.f32.gmra.mrb[12].mxu1 %v671_v12 }
 0x15c   :  { %v674_v14 = vpop.f32.mrb[14].mxu0 }
 0x15d   :  { %v275_v15 = vpop.f32.mrb[15].mxu0 }
 0x15e   :  { %728 = vmatprep.mubr.f32.mxu1 %v275_v15 }
 0x15f   :  { %729 = vmatmul.mubr.f32.gmra.mrb[14].mxu1 %v674_v14 }
 0x216   :  { %v709_v17 = vpop.f32.mrb[0].mxu1 }
 0x217   :  { %v430_v18 = vadd.f32 %v709_v17, %v554_v16  ;;  %v424_v19 = vpop.f32.mrb[1].mxu1 }
 0x218   :  { %v425_v20 = vadd.f32 %v554_v16, %v424_v19 }
 0x219   :  { %v504_v21 = vmax.f32 %v430_v18, 0.0 }
 0x21a   :  { %v503_v22 = vmax.f32 %v425_v20, 0.0  ;;  %v712_v23 = vpop.f32.mrb[2].mxu1 }
 0x21b   :  { %520 = vst [vmem:[#allocation11 + $0x8] sm:$0xff] %v504_v21  ;;  %v440_v24 = vadd.f32 %v712_v23, %v554_v16  ;;  %v434_v25 = vpop.f32.mrb[3].mxu1 }
 0x21c   :  { %519 = vst [vmem:[#allocation11] sm:$0xff] %v503_v22  ;;  %v435_v26 = vadd.f32 %v554_v16, %v434_v25 }
 0x21d   :  { %v506_v27 = vmax.f32 %v440_v24, 0.0 }
 0x21e   :  { %v505_v28 = vmax.f32 %v435_v26, 0.0  ;;  %v715_v29 = vpop.f32.mrb[4].mxu1 }
 0x21f   :  { %522 = vst [vmem:[#allocation11 + $0x18] sm:$0xff] %v506_v27  ;;  %v450_v30 = vadd.f32 %v715_v29, %v554_v16  ;;  %v444_v31 = vpop.f32.mrb[5].mxu1 }
 0x220   :  { %521 = vst [vmem:[#allocation11 + $0x10] sm:$0xff] %v505_v28  ;;  %v445_v32 = vadd.f32 %v554_v16, %v444_v31 }
 0x221   :  { %v508_v33 = vmax.f32 %v450_v30, 0.0 }
 0x222   :  { %v507_v34 = vmax.f32 %v445_v32, 0.0  ;;  %v718_v35 = vpop.f32.mrb[6].mxu1 }
 0x223   :  { %524 = vst [vmem:[#allocation11 + $0x28] sm:$0xff] %v508_v33  ;;  %v460_v36 = vadd.f32 %v718_v35, %v554_v16  ;;  %v454_v37 = vpop.f32.mrb[7].mxu1 }
 0x224   :  { %523 = vst [vmem:[#allocation11 + $0x20] sm:$0xff] %v507_v34  ;;  %v455_v38 = vadd.f32 %v554_v16, %v454_v37 }
 0x225   :  { %v510_v39 = vmax.f32 %v460_v36, 0.0 }
 0x226   :  { %v509_v40 = vmax.f32 %v455_v38, 0.0  ;;  %v721_v41 = vpop.f32.mrb[8].mxu1 }
 0x227   :  { %526 = vst [vmem:[#allocation11 + $0x38] sm:$0xff] %v510_v39  ;;  %v470_v42 = vadd.f32 %v721_v41, %v554_v16  ;;  %v464_v43 = vpop.f32.mrb[9].mxu1 }
 0x228   :  { %525 = vst [vmem:[#allocation11 + $0x30] sm:$0xff] %v509_v40  ;;  %v465_v44 = vadd.f32 %v554_v16, %v464_v43 }
 0x229   :  { %v512_v45 = vmax.f32 %v470_v42, 0.0 }
 0x22a   :  { %v511_v46 = vmax.f32 %v465_v44, 0.0  ;;  %v724_v47 = vpop.f32.mrb[10].mxu1 }
 0x22b   :  { %528 = vst [vmem:[#allocation11 + $0x48] sm:$0xff] %v512_v45  ;;  %v480_v48 = vadd.f32 %v724_v47, %v554_v16  ;;  %v474_v49 = vpop.f32.mrb[11].mxu1 }
 0x22c   :  { %527 = vst [vmem:[#allocation11 + $0x40] sm:$0xff] %v511_v46  ;;  %v475_v50 = vadd.f32 %v554_v16, %v474_v49 }
 0x22d   :  { %v514_v51 = vmax.f32 %v480_v48, 0.0 }
 0x22e   :  { %v513_v52 = vmax.f32 %v475_v50, 0.0  ;;  %v727_v53 = vpop.f32.mrb[12].mxu1 }
 0x22f   :  { %530 = vst [vmem:[#allocation11 + $0x58] sm:$0xff] %v514_v51  ;;  %v490_v54 = vadd.f32 %v727_v53, %v554_v16  ;;  %v484_v55 = vpop.f32.mrb[13].mxu1 }
 0x230   :  { %529 = vst [vmem:[#allocation11 + $0x50] sm:$0xff] %v513_v52  ;;  %v485_v56 = vadd.f32 %v554_v16, %v484_v55 }
 0x231   :  { %v516_v57 = vmax.f32 %v490_v54, 0.0 }
 0x232   :  { %v515_v58 = vmax.f32 %v485_v56, 0.0  ;;  %v730_v59 = vpop.f32.mrb[14].mxu1 }
 0x233   :  { %532 = vst [vmem:[#allocation11 + $0x68] sm:$0xff] %v516_v57  ;;  %v500_v60 = vadd.f32 %v730_v59, %v554_v16  ;;  %v494_v61 = vpop.f32.mrb[15].mxu1 }
 0x234   :  { %531 = vst [vmem:[#allocation11 + $0x60] sm:$0xff] %v515_v58  ;;  %v495_v62 = vadd.f32 %v554_v16, %v494_v61 }
 0x235   :  { %v518_v63 = vmax.f32 %v500_v60, 0.0 }
 0x236   :  { %v517_v0 = vmax.f32 %v495_v62, 0.0 }
 0x237   :  { %534 = vst [vmem:[#allocation11 + $0x78] sm:$0xff] %v518_v63 }
 0x238   :  { %533 = vst [vmem:[#allocation11 + $0x70] sm:$0xff] %v517_v0 }
 0x239   :  { %901 = shalt.err (!%p898_p8)
}
 0x23a   :  { %s902_s16 = scalar_lea.hbm %s1035_s4, 2048 }
 0x23b   :  { %p903_p9 = scmp.ne.s32.totalorder %s1035_s4, %s902_s16  ;;  %p906_p10 = scmp.lt.u32.totalorder %s902_s16, %s1035_s4 }
 0x23d   :  { %p908_p11 = pnand %p906_p10, %p903_p9 }
 0x23f   :  { %911 = shalt.err (!%p908_p11)
}
 0x240   :  { %546 = dma.vmem_to_hbm [thread:$0]  %s541_s1, 2048, %s1035_s4, [#allocation5], %s922_s27, %s922_s27, %s923_s28  }
 0x241   :  { %918 = dma.done.wait [#allocation5], 2048  }
 0x242   :  { %919 = vsyncadd [#allocation5], 4294965248 }
 0x243   :  { %550 = vsyncpa [#allocation4], 1 }
 0x244   :  { %551 = vsyncpa [#allocation7], 1 }
 0x245   :  { %552 = vsyncpa [#allocation10], 1 }
 0x246   :  { %553 = vsyncpa [#allocation5], 1 }

</bundles_post_ra>
